<compile_context>
chip_gen: v6e
topology: v6e:2x2x1
jax: 0.10.0
libtpu: 0.0.40
codegen_flags: <defaults>
</compile_context>

<pallas_src>
import math
from functools import partial

import jax
import jax.numpy as jnp
from jax import lax
from jax.experimental import pallas as pl
from jax.experimental.pallas import tpu as pltpu


VMEM_LIMIT = 48 * 1024 * 1024   # headroom on v7x (64 MiB/TC); fine on v5e/v6e


def round_up(x, m):
    return (x + m - 1) // m * m


# --------------------------------------------------------------------------
# Pallas kernels
# --------------------------------------------------------------------------

def bmm_kernel(a_ref, b_ref, o_ref):
    # a_ref: (1, TM, Kp)  b_ref: (1, Kp, TN)  o_ref: (1, TM, TN)
    o_ref[0] = jnp.dot(a_ref[0], b_ref[0], preferred_element_type=jnp.float32)


def dwconv3x3_kernel(x_ref, w_ref, b_ref, o_ref):
    # Depthwise 3x3 conv; shifted windows are formed as VMEM slices (no HBM
    # im2col).  x_ref: (1, H+2, W+2, C)  w_ref: (9, C)  b_ref: (1, C)
    # o_ref: (1, H, W, C)
    H, W, C = o_ref.shape[1], o_ref.shape[2], o_ref.shape[3]
    acc = jnp.zeros((H, W, C), jnp.float32) + b_ref[0]
    t = 0
    for dy in range(3):
        for dx in range(3):
            acc = acc + x_ref[0, dy:dy + H, dx:dx + W, :] * w_ref[t]
            t += 1
    o_ref[0] = acc


def layernorm_kernel(x_ref, g_ref, b_ref, o_ref):
    # standard nn.LayerNorm over the last dim, eps = 1e-5
    x = x_ref[...]
    mean = jnp.mean(x, axis=-1, keepdims=True)
    var = jnp.mean(jnp.square(x - mean), axis=-1, keepdims=True)
    o_ref[...] = (x - mean) * lax.rsqrt(var + 1e-5) * g_ref[...] + b_ref[...]


def channel_norm_kernel(x_ref, g_ref, b_ref, o_ref):
    # custom LayerNorm from the reference: (x - mean) / (sqrt(var) + eps) * g + b
    x = x_ref[...]
    mean = jnp.mean(x, axis=-1, keepdims=True)
    var = jnp.mean(jnp.square(x - mean), axis=-1, keepdims=True)
    o_ref[...] = (x - mean) / (jnp.sqrt(var) + 1e-5) * g_ref[...] + b_ref[...]


def selective_scan_kernel(u_ref, delta_ref, a_ref, b_ref, c_ref, d_ref, bias_ref,
                          y_ref, h_ref, da_s, dbu_s, c_s, y_s):
    # Chunked selective scan (delta_softplus=True), all 4 directions at once.
    # u_ref/delta_ref/y_ref: (1, LC, K, d)   a_ref: (K, N, d)
    # b_ref/c_ref: (1, LC, K, N)             d_ref/bias_ref: (K, d)
    # scratch: h_ref (K, N, d) carried across chunks, da_s/dbu_s (LC, K, N, d),
    #          c_s (LC, K, N), y_s (LC, K, d)
    LC = u_ref.shape[1]

    @pl.when(pl.program_id(1) == 0)
    def _():
        h_ref[...] = jnp.zeros_like(h_ref)

    u = u_ref[0]                                               # (LC, K, d)
    xv = delta_ref[0] + bias_ref[...][None]                    # (LC, K, d)
    dt = jnp.maximum(xv, 0.0) + jnp.log1p(jnp.exp(-jnp.abs(xv)))   # softplus
    # Vectorized precompute (pipelined on EUP/VPU) -- hoisted off the
    # sequential critical path.
    da_s[...] = jnp.exp(dt[:, :, None, :] * a_ref[...][None])      # (LC,K,N,d)
    dbu_s[...] = b_ref[0][..., None] * (dt * u)[:, :, None, :]     # (LC,K,N,d)
    c_s[...] = c_ref[0]                                            # (LC,K,N)

    def step(l, h):
        h = da_s[l] * h + dbu_s[l]                                 # (K, N, d)
        y_s[pl.ds(l, 1), :, :] = jnp.sum(c_s[l][:, :, None] * h, axis=1)[None]
        return h

    h_ref[...] = lax.fori_loop(0, LC, step, h_ref[...])
    y_ref[0] = y_s[...] + u * d_ref[...][None]


# --------------------------------------------------------------------------
# Pallas wrappers
# --------------------------------------------------------------------------

@partial(jax.jit, static_argnames=("n_out",))
def pallas_bmm(a, b_p, *, n_out):
    # a: (G, M, K); b_p: (G, Kp, Np) with Kp, Np pre-padded to multiples of 128.
    G, M, K = a.shape
    Kp, Np = b_p.shape[1], b_p.shape[2]
    tm = 256
    tn = 256 if Np % 256 == 0 else 128
    Mp = round_up(M, tm)
    a_p = jnp.pad(a, ((0, 0), (0, Mp - M), (0, Kp - K)))
    out = pl.pallas_call(
        bmm_kernel,
        grid=(G, Mp // tm, Np // tn),
        in_specs=[pl.BlockSpec((1, tm, Kp), lambda g, i, j: (g, i, 0)),
                  pl.BlockSpec((1, Kp, tn), lambda g, i, j: (g, 0, j))],
        out_specs=pl.BlockSpec((1, tm, tn), lambda g, i, j: (g, i, j)),
        out_shape=jax.ShapeDtypeStruct((G, Mp, Np), jnp.float32),
        compiler_params=pltpu.CompilerParams(
            dimension_semantics=("parallel", "parallel", "parallel"),
            vmem_limit_bytes=VMEM_LIMIT),
    )(a_p, b_p)
    return out[:, :M, :n_out]


def pallas_matmul(a, b_p, *, n_out):
    return pallas_bmm(a[None], b_p[None], n_out=n_out)[0]


@partial(jax.jit, static_argnames=("cout",))
def pallas_conv3x3(x, w_p, *, cout):
    # 3x3 conv, stride 1, SAME (stand-in for harm3x3): 9 taps folded into the
    # matmul contraction dim (one MXU matmul, K = 9*Cin padded once).
    B, H, W, Cin = x.shape
    xp = jnp.pad(x, ((0, 0), (1, 1), (1, 1), (0, 0)))
    cols = jnp.concatenate(
        [xp[:, dy:dy + H, dx:dx + W, :] for dy in range(3) for dx in range(3)],
        axis=-1)                                        # (B, H, W, 9*Cin)
    out = pallas_matmul(cols.reshape(B * H * W, 9 * Cin), w_p, n_out=cout)
    return out.reshape(B, H, W, cout)


@jax.jit
def pallas_dwconv3x3(x, w9, b):
    # Depthwise 3x3 conv, NHWC; w9: (9, C), b: (C,).  Halo windows are sliced
    # inside the kernel (no 9x HBM im2col).
    B, H, W, C = x.shape
    xp = jnp.pad(x, ((0, 0), (1, 1), (1, 1), (0, 0)))
    return pl.pallas_call(
        dwconv3x3_kernel,
        grid=(B,),
        in_specs=[pl.BlockSpec((1, H + 2, W + 2, C), lambda i: (i, 0, 0, 0)),
                  pl.BlockSpec((9, C), lambda i: (0, 0)),
                  pl.BlockSpec((1, C), lambda i: (0, 0))],
        out_specs=pl.BlockSpec((1, H, W, C), lambda i: (i, 0, 0, 0)),
        out_shape=jax.ShapeDtypeStruct((B, H, W, C), jnp.float32),
        compiler_params=pltpu.CompilerParams(
            dimension_semantics=("parallel",),
            vmem_limit_bytes=VMEM_LIMIT),
    )(xp, w9, b.reshape(1, C))


def _norm_call(kernel, x2d, g, b):
    M, C = x2d.shape
    Mp = round_up(M, 8)
    tm = 256 if Mp % 256 == 0 else Mp
    xp = jnp.pad(x2d, ((0, Mp - M), (0, 0)))
    out = pl.pallas_call(
        kernel,
        grid=(Mp // tm,),
        in_specs=[pl.BlockSpec((tm, C), lambda i: (i, 0)),
                  pl.BlockSpec((1, C), lambda i: (0, 0)),
                  pl.BlockSpec((1, C), lambda i: (0, 0))],
        out_specs=pl.BlockSpec((tm, C), lambda i: (i, 0)),
        out_shape=jax.ShapeDtypeStruct((Mp, C), jnp.float32),
        compiler_params=pltpu.CompilerParams(
            dimension_semantics=("parallel",),
            vmem_limit_bytes=VMEM_LIMIT),
    )(xp, g.reshape(1, C), b.reshape(1, C))
    return out[:M]


@jax.jit
def pallas_layernorm(x2d, g, b):
    return _norm_call(layernorm_kernel, x2d, g, b)


@jax.jit
def pallas_channel_norm(x2d, g, b):
    return _norm_call(channel_norm_kernel, x2d, g, b)


def _chunk_len(L):
    for c in (64, 32, 16, 8):
        if L % c == 0:
            return c
    return L


@jax.jit
def pallas_selective_scan(u, delta, a_t, bs, cs, dp, dtb):
    # u, delta: (B, L, K, d); bs, cs: (B, L, K, N); a_t: (K, N, d); dp, dtb: (K, d)
    B, L, K, d = u.shape
    N = a_t.shape[1]
    LC = _chunk_len(L)
    NC = L // LC
    return pl.pallas_call(
        selective_scan_kernel,
        grid=(B, NC),
        in_specs=[
            pl.BlockSpec((1, LC, K, d), lambda b, c: (b, c, 0, 0)),
            pl.BlockSpec((1, LC, K, d), lambda b, c: (b, c, 0, 0)),
            pl.BlockSpec((K, N, d), lambda b, c: (0, 0, 0)),
            pl.BlockSpec((1, LC, K, N), lambda b, c: (b, c, 0, 0)),
            pl.BlockSpec((1, LC, K, N), lambda b, c: (b, c, 0, 0)),
            pl.BlockSpec((K, d), lambda b, c: (0, 0)),
            pl.BlockSpec((K, d), lambda b, c: (0, 0)),
        ],
        out_specs=pl.BlockSpec((1, LC, K, d), lambda b, c: (b, c, 0, 0)),
        out_shape=jax.ShapeDtypeStruct((B, L, K, d), jnp.float32),
        scratch_shapes=[pltpu.VMEM((K, N, d), jnp.float32),      # h (carried)
                        pltpu.VMEM((LC, K, N, d), jnp.float32),  # dA
                        pltpu.VMEM((LC, K, N, d), jnp.float32),  # dB*u
                        pltpu.VMEM((LC, K, N), jnp.float32),     # C
                        pltpu.VMEM((LC, K, d), jnp.float32)],    # y chunk
        compiler_params=pltpu.CompilerParams(
            dimension_semantics=("parallel", "arbitrary"),
            vmem_limit_bytes=VMEM_LIMIT),
    )(u, delta, a_t, bs, cs, dp, dtb)


# --------------------------------------------------------------------------
# Plain-JAX glue
# --------------------------------------------------------------------------

def batchnorm2d(x, eps=1e-5):
    # training-mode BatchNorm2d with default affine (gamma=1, beta=0), NHWC
    mean = jnp.mean(x, axis=(0, 1, 2), keepdims=True)
    var = jnp.mean(jnp.square(x - mean), axis=(0, 1, 2), keepdims=True)
    return (x - mean) * lax.rsqrt(var + eps)


def silu(x):
    return jax.nn.silu(x)


def absolute_positional_encoder(emb_dim, max_position=512):
    position = jnp.arange(max_position, dtype=jnp.float32)[:, None]
    _2i = jnp.arange(0, emb_dim, 2, dtype=jnp.float32)
    div = 10000.0 ** (_2i / emb_dim)
    pe = jnp.zeros((1, max_position, emb_dim), jnp.float32)
    pe = pe.at[0, :, 0::2].set(jnp.sin(position / div))
    pe = pe.at[0, :, 1::2].set(jnp.cos(position / div))
    return pe


# --------------------------------------------------------------------------
# Parameter initialization (deterministic, synthetic, weights pre-folded/padded)
# --------------------------------------------------------------------------

class KeyGen:
    def __init__(self, seed):
        self.key = jax.random.PRNGKey(seed)

    def __call__(self):
        self.key, sub = jax.random.split(self.key)
        return sub


def pad_mat(w):
    k, n = w.shape
    return jnp.pad(w, ((0, round_up(k, 128) - k), (0, round_up(n, 128) - n)))


def lin_w(kg, fan_in, fan_out):
    bound = 1.0 / math.sqrt(fan_in)
    w = jax.random.uniform(kg(), (fan_in, fan_out), jnp.float32, -bound, bound)
    return pad_mat(w)


def conv_w(kg, cin, cout):
    bound = 1.0 / math.sqrt(cin * 9)
    w = jax.random.uniform(kg(), (3, 3, cin, cout), jnp.float32, -bound, bound)
    return pad_mat(w.reshape(9 * cin, cout))     # taps folded into K, padded once


def init_ss2d(kg, d_model, d_state=16):
    d_inner = 2 * d_model
    R = math.ceil(d_model / 16)
    w_all = []
    for _ in range(4):
        bound = 1.0 / math.sqrt(d_inner)
        wx = jax.random.uniform(kg(), (d_inner, R + 2 * d_state), jnp.float32,
                                -bound, bound)
        wdt = jax.random.uniform(kg(), (R, d_inner), jnp.float32,
                                 -R ** -0.5, R ** -0.5)
        # fold the tiny dt projection into x_proj:
        # delta = (x @ wx[:, :R]) @ wdt == x @ (wx[:, :R] @ wdt)
        w_comp = jnp.dot(wx[:, :R], wdt)
        w_all.append(jnp.concatenate([w_comp, wx[:, R:]], axis=1))
    proj_w = jnp.stack([pad_mat(w) for w in w_all], 0)   # (4, Kp, Np)

    dt = jnp.exp(jax.random.uniform(kg(), (4, d_inner), jnp.float32)
                 * (math.log(0.1) - math.log(0.001)) + math.log(0.001))
    dt = jnp.maximum(dt, 1e-4)
    dt_b = dt + jnp.log(-jnp.expm1(-dt))
    a_log = jnp.log(jnp.tile(jnp.arange(1, d_state + 1, dtype=jnp.float32)[None, :],
                             (d_inner, 1)))                  # (d_inner, N)
    bound = 1.0 / 3.0  # depthwise conv fan_in = 9
    return dict(
        d_model=d_model, d_inner=d_inner, d_state=d_state,
        in_proj_w=lin_w(kg, d_model, 2 * d_inner),
        conv_w=jax.random.uniform(kg(), (9, d_inner), jnp.float32, -bound, bound),
        conv_b=jax.random.uniform(kg(), (d_inner,), jnp.float32, -bound, bound),
        proj_w=proj_w,                                   # (4, Kp, d_inner+2N pad)
        dt_projs_bias=dt_b,                              # (4, d_inner)
        A_logs=jnp.tile(a_log[None], (4, 1, 1)),         # (4, d_inner, N)
        Ds=jnp.ones((4, d_inner), jnp.float32),
        out_norm_g=jnp.ones((d_inner,), jnp.float32),
        out_norm_b=jnp.zeros((d_inner,), jnp.float32),
        out_proj_w=lin_w(kg, d_inner, d_model),
    )


def init_vssblock(kg, c):
    return dict(ln_g=jnp.ones((c,), jnp.float32), ln_b=jnp.zeros((c,), jnp.float32),
                ss2d=init_ss2d(kg, c))


def init_mamba_layer(kg, in_chans, dim):
    return dict(
        dim=dim,
        pe_w=conv_w(kg, in_chans, in_chans),
        pe_ln_g=jnp.ones((in_chans,), jnp.float32),
        pe_ln_b=jnp.zeros((in_chans,), jnp.float32),
        vss=[init_vssblock(kg, in_chans) for _ in range(2)],
        cm_w1=conv_w(kg, in_chans, dim), cm_w2=conv_w(kg, dim, in_chans),
        ct_w1=conv_w(kg, in_chans, dim), ct_w2=conv_w(kg, dim, in_chans),
        hconv_w=conv_w(kg, in_chans, in_chans),
        hln_g=jnp.ones((in_chans,), jnp.float32),
        hln_b=jnp.zeros((in_chans,), jnp.float32),
        cf_w=conv_w(kg, 2 * in_chans, in_chans),
    )


def init_dfs_block(kg, in_ch, down_ch, units, growth):
    unit_ws = []
    c = down_ch
    for _ in range(units):
        unit_ws.append(conv_w(kg, c, growth))
        c += growth
    return dict(down_ch=down_ch, growth=growth,
                down_w=conv_w(kg, in_ch, down_ch),
                unit_ws=unit_ws,
                mamba=init_mamba_layer(kg, c, growth))


def init_tmamba(seed, in_channels, num_classes, input_size=(16, 16)):
    kg = KeyGen(seed)
    num_down = [24, 24, 24]
    units = [5, 10, 10]
    growth = [4, 8, 16]
    W, H = input_size
    dfs = []
    c = in_channels
    for i in range(3):
        dfs.append(init_dfs_block(kg, c, num_down[i], units[i], growth[i]))
        c = num_down[i] + units[i] * growth[i]
    # positional embeddings exist in __init__ but are never consumed by forward
    pos_embed = [absolute_positional_encoder(growth[i],
                                             max(int(H * W / 4 ** (i + 1)), 1))
                 for i in range(3)]
    return dict(
        num_classes=num_classes,
        stem_w=conv_w(kg, in_channels, 256),
        dfs=dfs,
        conv_final_w=conv_w(kg, c, 256),
        cls_w=lin_w(kg, 256, num_classes),
        cls_b=jnp.zeros((num_classes,), jnp.float32),
        var1=jax.random.uniform(kg(), (), jnp.float32, 0.0, 1.0),
        pos_embed=pos_embed,  # unused in forward (matches reference)
    )


# --------------------------------------------------------------------------
# Model forward (glue calling the Pallas kernels)
# --------------------------------------------------------------------------

def ss2d_forward(p, x):
    # x: (B, H, W, C)
    B, H, W, C = x.shape
    d = p['d_inner']
    N = p['d_state']
    K = 4
    L = H * W

    xz = pallas_matmul(x.reshape(B * L, C), p['in_proj_w'], n_out=2 * d)
    xi = xz[:, :d].reshape(B, H, W, d)
    z = xz[:, d:]                                                     # (BL, d)

    xc = silu(pallas_dwconv3x3(xi, p['conv_w'], p['conv_b']))         # (B,H,W,d)

    s0 = xc.reshape(B, L, d)                                          # row-major
    s1 = jnp.transpose(xc, (0, 2, 1, 3)).reshape(B, L, d)             # col-major
    xs_k = jnp.stack([s0, s1, jnp.flip(s0, 1), jnp.flip(s1, 1)], 0)   # (K,B,L,d)

    # fused x_proj + dt_proj for all 4 directions in ONE batched pallas matmul
    proj = pallas_bmm(xs_k.reshape(K, B * L, d), p['proj_w'], n_out=d + 2 * N)
    proj = proj.reshape(K, B, L, d + 2 * N)
    delta = jnp.transpose(proj[..., :d], (1, 2, 0, 3))                # (B,L,K,d)
    Bs = jnp.transpose(proj[..., d:d + N], (1, 2, 0, 3))              # (B,L,K,N)
    Cs = jnp.transpose(proj[..., d + N:], (1, 2, 0, 3))               # (B,L,K,N)
    u = jnp.transpose(xs_k, (1, 2, 0, 3))                             # (B,L,K,d)

    A_t = jnp.transpose(-jnp.exp(p['A_logs']), (0, 2, 1))             # (K,N,d)

    y = pallas_selective_scan(u, delta, A_t, Bs, Cs,
                              p['Ds'], p['dt_projs_bias'])            # (B,L,K,d)

    y0 = y[:, :, 0, :]
    y1 = y[:, :, 1, :]
    y2 = jnp.flip(y[:, :, 2, :], axis=1)
    y3 = jnp.flip(y[:, :, 3, :], axis=1)
    wh = jnp.transpose(y1.reshape(B, W, H, d), (0, 2, 1, 3)).reshape(B, L, d)
    invwh = jnp.transpose(y3.reshape(B, W, H, d), (0, 2, 1, 3)).reshape(B, L, d)
    ysum = (y0 + y2 + wh + invwh).reshape(B * L, d)

    yn = pallas_layernorm(ysum, p['out_norm_g'], p['out_norm_b'])
    yg = yn * silu(z)
    out = pallas_matmul(yg, p['out_proj_w'], n_out=C).reshape(B, H, W, C)
    return out


def mamba_layer_forward(p, x):
    # x: (B, H, W, C)
    B, H, W, C = x.shape
    dim = p['dim']
    residual = x
    transf = x

    # PatchEmbed2D (patch_size=1): conv -> LayerNorm
    pe = pallas_conv3x3(x, p['pe_w'], cout=C)
    pe = pallas_layernorm(pe.reshape(B * H * W, C),
                          p['pe_ln_g'], p['pe_ln_b']).reshape(B, H, W, C)

    # VSSLayer (depth 2): x = x + SS2D(LN(x))
    xm = pe
    for blk in p['vss']:
        ln = pallas_layernorm(xm.reshape(B * H * W, C),
                              blk['ln_g'], blk['ln_b']).reshape(B, H, W, C)
        xm = xm + ss2d_forward(blk['ss2d'], ln)

    # conv_mamba
    xm = pallas_conv3x3(xm, p['cm_w1'], cout=dim)
    xm = pallas_conv3x3(xm, p['cm_w2'], cout=C)

    # transformer path
    transf = pallas_conv3x3(transf, p['hconv_w'], cout=C)
    transf = pallas_channel_norm(transf.reshape(B * H * W, C),
                                 p['hln_g'], p['hln_b']).reshape(B, H, W, C)
    # TODO(synk): CvT Transformer block not defined in reference -> identity.
    transf = pallas_conv3x3(transf, p['ct_w1'], cout=dim)
    transf = pallas_conv3x3(transf, p['ct_w2'], cout=C)

    out = jnp.concatenate([xm, transf], axis=-1)
    out = pallas_conv3x3(out, p['cf_w'], cout=C)
    return out + residual


def dfs_block_forward(p, x):
    # DownsampleWithDfs2D: preactivated ConvBlock then DenseFeatureStack
    x = pallas_conv3x3(jax.nn.relu(batchnorm2d(x)), p['down_w'], cout=p['down_ch'])
    feats = [x]
    for wu in p['unit_ws']:
        inp = jnp.concatenate(feats, axis=-1)
        out = pallas_conv3x3(jax.nn.relu(batchnorm2d(inp)), wu, cout=p['growth'])
        feats.append(out)
    x_out = jnp.concatenate(feats, axis=-1)
    return mamba_layer_forward(p['mamba'], x_out)


def stem_forward(w, x):
    # TODO(synk): HConvEtAl not defined in reference; conv->BN->ReLU->GAP stand-in.
    h = pallas_conv3x3(x, w, cout=256)
    h = jax.nn.relu(batchnorm2d(h))
    return jnp.mean(h, axis=(1, 2))  # (B, 256)


def tmamba2d_forward(params, x_nchw):
    # x_nchw: (B, C, H, W) like PyTorch
    x = jnp.squeeze(x_nchw)                       # mimic torch .squeeze()
    x = jnp.transpose(x, (0, 2, 3, 1))            # -> NHWC

    x1 = stem_forward(params['stem_w'], x)        # (B, 256)

    h = x
    for p in params['dfs']:
        h = dfs_block_forward(p, h)

    var1 = jnp.clip(params['var1'], 1e-7, 0.9999)
    var2 = 1.0 - var1

    cf = pallas_conv3x3(h, params['conv_final_w'], cout=256)
    cf = jax.nn.relu(batchnorm2d(cf))
    pooled = jnp.mean(cf, axis=(1, 2))            # AdaptiveAvgPool2d(1) + flatten

    out = var1 * pooled + var2 * x1
    logits = (pallas_matmul(out, params['cls_w'], n_out=params['num_classes'])
              + params['cls_b'])
    return logits


# --------------------------------------------------------------------------

if __name__ == "__main__":
    B, C, H, W = 2, 4, 16, 16
    params = init_tmamba(seed=0, in_channels=C, num_classes=1, input_size=(W, H))
    x = jax.random.normal(jax.random.PRNGKey(0), (B, C, H, W), jnp.float32)

    logits = tmamba2d_forward(params, x)
    logits = jax.block_until_ready(logits)

    assert logits.shape == (B, 1), logits.shape
    assert bool(jnp.all(jnp.isfinite(logits)))
    print("KERNEL_OK")
</pallas_src>

<mosaic_0001>
module attributes {stable_mosaic.version = 11 : i64} {
  func.func @bmm_kernel(%arg0: i32, %arg1: i32, %arg2: i32, %arg3: memref<1x256x128xf32, #tpu.memory_space<vmem>>, %arg4: memref<1x128x256xf32, #tpu.memory_space<vmem>>, %arg5: memref<1x256x256xf32, #tpu.memory_space<vmem>>) attributes {dimension_semantics = [#tpu.dimension_semantics<parallel>, #tpu.dimension_semantics<parallel>, #tpu.dimension_semantics<parallel>], iteration_bounds = array<i64: 1, 2, 1>, scalar_prefetch = 0 : i64, scratch_operands = 0 : i64, tpu.core_type = #tpu.core_type<tc>, window_params = [{transform_indices = @transform_0, window_bounds = array<i64: 1, 256, 128>}, {transform_indices = @transform_1, window_bounds = array<i64: 1, 128, 256>}, {transform_indices = @transform_2, window_bounds = array<i64: 1, 256, 256>}]} {
    %c0 = arith.constant 0 : index
    %c0_0 = arith.constant 0 : index
    %c0_1 = arith.constant 0 : index
    %0 = vector.load %arg3[%c0, %c0_0, %c0_1] : memref<1x256x128xf32, #tpu.memory_space<vmem>>, vector<1x256x128xf32>
    %1 = vector.shape_cast %0 : vector<1x256x128xf32> to vector<256x128xf32>
    %c0_2 = arith.constant 0 : index
    %c0_3 = arith.constant 0 : index
    %c0_4 = arith.constant 0 : index
    %2 = vector.load %arg4[%c0_2, %c0_3, %c0_4] : memref<1x128x256xf32, #tpu.memory_space<vmem>>, vector<1x128x256xf32>
    %3 = vector.shape_cast %2 : vector<1x128x256xf32> to vector<128x256xf32>
    %cst = arith.constant dense<0.000000e+00> : vector<256x256xf32>
    %4 = tpu.matmul %1, %3, %cst {dimension_numbers = #tpu.dot_dimension_numbers<[1], [0], [0], [1], [0, 0, 1, 1], [], []>} : vector<256x128xf32>, vector<128x256xf32>, vector<256x256xf32> -> vector<256x256xf32>
    %c0_5 = arith.constant 0 : index
    %c0_6 = arith.constant 0 : index
    %c0_7 = arith.constant 0 : index
    %5 = vector.load %arg5[%c0_5, %c0_6, %c0_7] : memref<1x256x256xf32, #tpu.memory_space<vmem>>, vector<1x256x256xf32>
    %6 = vector.shape_cast %5 : vector<1x256x256xf32> to vector<256x256xf32>
    %7 = vector.shape_cast %4 : vector<256x256xf32> to vector<1x256x256xf32>
    tpu.vector_store %arg5[%c0_5, %c0_6, %c0_7], %7 {strides = array<i32>} : memref<1x256x256xf32, #tpu.memory_space<vmem>>, vector<1x256x256xf32>,
    return
  }
  func.func @transform_0(%arg0: i32, %arg1: i32, %arg2: i32) -> (i32, i32, i32) {
    %c0_i32 = arith.constant 0 : i32
    %c0_i32_0 = arith.constant 0 : i32
    return %arg0, %arg1, %c0_i32 : i32, i32, i32
  }
  func.func @transform_1(%arg0: i32, %arg1: i32, %arg2: i32) -> (i32, i32, i32) {
    %c0_i32 = arith.constant 0 : i32
    %c0_i32_0 = arith.constant 0 : i32
    return %arg0, %c0_i32, %arg2 : i32, i32, i32
  }
  func.func @transform_2(%arg0: i32, %arg1: i32, %arg2: i32) -> (i32, i32, i32) {
    %c0_i32 = arith.constant 0 : i32
    return %arg0, %arg1, %arg2 : i32, i32, i32
  }
}

</mosaic_0001>

<bundles_post_ra>
// kernel: pallas_bmm.1
= control target key start
LH: loop header
LB: loop body
LE: loop exit
PB: predicated region body
PF: predicated region fallthrough
CT: control target
= control target key end

     0   :  { %7 = vsyncpa [#allocation3], 0  ;;  %s1278_s0 = inlined_call_operand.vmem [shape: f32[1,512,128], index: 0, kind: input, shape index: {}]   ;;  %s1279_s1 = inlined_call_operand.vmem [shape: f32[1,128,256], index: 1, kind: input, shape index: {}]   ;;  %s1280_s2 = inlined_call_operand.hbm [shape: f32[1,512,256], index: 2, kind: output, shape index: {}]  }
   0x1   :  { %9 = vsyncpa [#allocation3 + $0x1], 0  ;;  %s932_s9 = smov 0   ;;  %s934_s10 = smov 0  }
   0x2   :  { %s936_s11 = smov 0   ;;  %s938_s12 = smov 0  }
   0x3   :  { %s940_s13 = smov 0   ;;  %s942_s14 = smov 0  }
   0x4 LB: > { %s728_s15 = sadd.s32 4294967295, %s911_s14   ;;  %s729_s16 = sadd.s32 4294967294, %s911_s14   ;;  %s911_s14 = sphi %s942_s14, %s15_s14   ;;  %s907_s13 = sphi %s940_s13, %s1287_s13   ;;  %s903_s12 = sphi %s938_s12, %s1286_s12   ;;  %s899_s11 = sphi %s936_s11, %s1285_s11   ;;  %s895_s10 = sphi %s934_s10, %s1284_s10   ;;  %s891_s9 = sphi %s932_s9, %s1283_s9  }
   0x5   : > { %s30_s17 = sadd.s32 1, %s907_s13  ;;  %s101_s18 = sadd.s32 1, %s899_s11 }
   0x6   : > { %p32_p0 = scmp.ge.s32.totalorder %s30_s17, 2  ;;  %p111_p1 = scmp.ne.s32.totalorder %s899_s11, %s895_s10 }
   0x7   : > { %p112_p2 = scmp.eq.s32.totalorder %s728_s15, 1  ;;  %p117_p3 = scmp.ne.s32.totalorder %s895_s10, %s891_s9 }
   0x8   : > { %s1289_s17 = smov (%p32_p0, %s30_s17), 0  ;;  %p118_p5 = scmp.eq.s32.totalorder %s729_s16, 1 }
   0x9   : > { %p972_p4 = por %p112_p2, %p111_p1  ;;  %s95_s20 = ssub.s32 %s907_s13, %s1289_s17 }
   0xa   : > { %p733_p6 = scmp.ge.s32.totalorder %s911_s14, 1  ;;  %p99_p7 = scmp.eq.s32.totalorder %s95_s20, 0 }
   0xb   : > { %p979_p8 = por %p118_p5, %p117_p3  ;;  %p162_p9 = scmp.lt.s32.totalorder %s911_s14, 3 }
   0xc   : > { %s985_s22 = scalar_select %p99_p7, %s899_s11, %s101_s18  }
   0xd   : > { %p163_p10 = pnand %p733_p6, %p162_p9 }
   0xe   : > { %s735_s18 = sshll.u32 (!%p163_p10), %s903_s12, 5  ;;  %s194_s16 = sand.u32 (!%p163_p10), 1, %s895_s10  }
   0xf   : > { %166 = sbr.rel (%p163_p10) target bundleno = 323 (0x143), region = 28  ;;  %p200_p11 = scmp.lt.s32.totalorder (!%p163_p10), %s735_s18, 63 }
  0x10   : > { %s734_s20 = sshll.u32 (!%p163_p10), %s194_s16, 9  ;;  %s744_s24 = sshll.u32 (!%p163_p10), %s903_s12, 13 }
  0x11   : > { %s1156_s23 = scalar_lea.vmem (!%p163_p10), [#allocation2], %s734_s20  ;;  %s1223_s28 = scalar_lea.hbm (!%p163_p10), %s1280_s2, %s744_s24 }
  0x12   : > { %s623_s25 = sshll.u32 (!%p163_p10), %s1156_s23, 4  ;;  %s1233_s12 = scalar_lea.sflag (!%p163_p10), [#allocation3], %s194_s16  ;;  %s1225_s25 = int_to_ptr.vmem [resolvable:$true] %s623_s25 }
  0x13   : > { %s835_s29 = scalar_lea.vmem (!%p163_p10), %s1225_s25, 8192  ;;  %s914_s30 = smov (!%p163_p10), [#allocation2]  }
  0x14   : > { %v282_v0 = vld [vmem:[%s1279_s1 + $0xf8] sm:$0xff]  ;;  %v281_v1 = vld [vmem:[%s1279_s1 + $0xf0] sm:$0xff]  ;;  %v280_v2 = vld [vmem:[%s1279_s1 + $0xe8] sm:$0xff]  ;;  %s1291_s18 = smov (!%p200_p11, %s735_s18), 63  ;;  %v913_v34 = vmov 0.0   ;;  %p836_p12 = scmp.ne.s32.totalorder %s1225_s25, %s835_s29 }
  0x15   : > { %283 = vmatprep.subr.mxu0 %v282_v0  ;;  %745 = vmatprep.subr.mxu1 %v282_v0  ;;  %v279_v3 = vld [vmem:[%s1279_s1 + $0xe0] sm:$0xff]  ;;  %v278_v4 = vld [vmem:[%s1279_s1 + $0xd8] sm:$0xff]  ;;  %v277_v5 = vld [vmem:[%s1279_s1 + $0xd0] sm:$0xff]  ;;  %s736_s27 = sshll.u32 %s1291_s18, 3  ;;  %s839_s3 = sshll.u32 %s914_s30, 4  ;;  %s840_s3 = int_to_ptr.vmem [resolvable:$false] %s839_s3 }
  0x16   : > { %284 = vmatpush1.msra.mxu0 %v281_v1  ;;  %761 = vmatpush1.msra.mxu1 %v281_v1  ;;  %v276_v6 = vld [vmem:[%s1279_s1 + $0xc8] sm:$0xff]  ;;  %v275_v7 = vld [vmem:[%s1279_s1 + $0xc0] sm:$0xff]  ;;  %v274_v8 = vld [vmem:[%s1279_s1 + $0xb8] sm:$0xff]  ;;  %s1084_s7 = scalar_lea.vmem %s1278_s0, %s736_s27  ;;  %p837_p13 = pnand %p836_p12, %p972_p4 }
  0x17   : > { %285 = vmatprep.subr.mxu0 %v280_v2  ;;  %746 = vmatprep.subr.mxu1 %v280_v2  ;;  %v273_v9 = vld [vmem:[%s1279_s1 + $0xb0] sm:$0xff]  ;;  %v272_v10 = vld [vmem:[%s1279_s1 + $0xa8] sm:$0xff]  ;;  %v271_v11 = vld [vmem:[%s1279_s1 + $0xa0] sm:$0xff]  ;;  %s841_s4 = scalar_lea.vmem %s840_s3, 16384  ;;  %p842_p1 = scmp.lt.s32.totalorder %s1225_s25, %s840_s3 }
  0x18   : > { %286 = vmatpush1.msra.mxu0 %v279_v3  ;;  %762 = vmatpush1.msra.mxu1 %v279_v3  ;;  %v270_v12 = vld [vmem:[%s1279_s1 + $0x98] sm:$0xff]  ;;  %v269_v13 = vld [vmem:[%s1279_s1 + $0x90] sm:$0xff]  ;;  %v268_v14 = vld [vmem:[%s1279_s1 + $0x88] sm:$0xff]  ;;  %p838_p0 = pneg %p837_p13  ;;  %p843_p2 = scmp.lt.s32.totalorder %s841_s4, %s835_s29 }
  0x19   : > { %287 = vmatprep.subr.mxu0 %v278_v4  ;;  %747 = vmatprep.subr.mxu1 %v278_v4  ;;  %v267_v15 = vld [vmem:[%s1279_s1 + $0x80] sm:$0xff]  ;;  %v266_v16 = vld [vmem:[%s1279_s1 + $0x78] sm:$0xff]  ;;  %v265_v17 = vld [vmem:[%s1279_s1 + $0x70] sm:$0xff] }
  0x1a   : > { %288 = vmatpush1.msra.mxu0 %v277_v5  ;;  %763 = vmatpush1.msra.mxu1 %v277_v5  ;;  %v264_v18 = vld [vmem:[%s1279_s1 + $0x68] sm:$0xff]  ;;  %v263_v19 = vld [vmem:[%s1279_s1 + $0x60] sm:$0xff]  ;;  %v262_v20 = vld [vmem:[%s1279_s1 + $0x58] sm:$0xff]  ;;  %p844_p3 = por %p843_p2, %p842_p1 }
  0x1b   : > { %289 = vmatprep.subr.mxu0 %v276_v6  ;;  %748 = vmatprep.subr.mxu1 %v276_v6  ;;  %v261_v21 = vld [vmem:[%s1279_s1 + $0x50] sm:$0xff]  ;;  %v260_v22 = vld [vmem:[%s1279_s1 + $0x48] sm:$0xff]  ;;  %v259_v23 = vld [vmem:[%s1279_s1 + $0x40] sm:$0xff] }
  0x1c   : > { %290 = vmatpush1.msra.mxu0 %v275_v7  ;;  %764 = vmatpush1.msra.mxu1 %v275_v7  ;;  %v258_v24 = vld [vmem:[%s1279_s1 + $0x38] sm:$0xff]  ;;  %v257_v25 = vld [vmem:[%s1279_s1 + $0x30] sm:$0xff]  ;;  %v256_v26 = vld [vmem:[%s1279_s1 + $0x28] sm:$0xff]  ;;  %p845_p5 = pnand %p844_p3, %p838_p0 }
  0x1d   : > { %291 = vmatprep.subr.mxu0 %v274_v8  ;;  %749 = vmatprep.subr.mxu1 %v274_v8  ;;  %v255_v27 = vld [vmem:[%s1279_s1 + $0x20] sm:$0xff]  ;;  %v254_v28 = vld [vmem:[%s1279_s1 + $0x18] sm:$0xff]  ;;  %v253_v29 = vld [vmem:[%s1279_s1 + $0x10] sm:$0xff] }
  0x1e   : > { %292 = vmatpush1.msra.mxu0 %v273_v9  ;;  %765 = vmatpush1.msra.mxu1 %v273_v9  ;;  %v252_v30 = vld [vmem:[%s1279_s1 + $0x8] sm:$0xff]  ;;  %v251_v31 = vld [vmem:[%s1279_s1] sm:$0xff]  ;;  %v221_v37 = vld [vmem:[%s1084_s7 + $0x10] sm:$0xff] }
  0x1f   : > { %293 = vmatprep.subr.mxu0 %v272_v10  ;;  %750 = vmatprep.subr.mxu1 %v272_v10  ;;  %v219_v32 = vld [vmem:[%s1084_s7] sm:$0xff]  ;;  %v220_v35 = vld [vmem:[%s1084_s7 + $0x8] sm:$0xff]  ;;  %v237_v38 = vld [vmem:[%s1084_s7 + $0x90] sm:$0xff] }
  0x20   : > { %294 = vmatpush1.msra.mxu0 %v271_v11  ;;  %766 = vmatpush1.msra.mxu1 %v271_v11  ;;  %v235_v33 = vld [vmem:[%s1084_s7 + $0x80] sm:$0xff]  ;;  %v236_v36 = vld [vmem:[%s1084_s7 + $0x88] sm:$0xff]  ;;  %v222_v39 = vld [vmem:[%s1084_s7 + $0x18] sm:$0xff] }
  0x21   : > { %295 = vmatprep.subr.mxu0 %v270_v12  ;;  %751 = vmatprep.subr.mxu1 %v270_v12  ;;  %v238_v40 = vld [vmem:[%s1084_s7 + $0x98] sm:$0xff]  ;;  %v223_v41 = vld [vmem:[%s1084_s7 + $0x20] sm:$0xff]  ;;  %v224_v43 = vld [vmem:[%s1084_s7 + $0x28] sm:$0xff] }
  0x22   : > { %296 = vmatpush1.msra.mxu0 %v269_v13  ;;  %767 = vmatpush1.msra.mxu1 %v269_v13  ;;  %v239_v42 = vld [vmem:[%s1084_s7 + $0xa0] sm:$0xff]  ;;  %v240_v44 = vld [vmem:[%s1084_s7 + $0xa8] sm:$0xff]  ;;  %v225_v45 = vld [vmem:[%s1084_s7 + $0x30] sm:$0xff] }
  0x23   : > { %297 = vmatprep.subr.mxu0 %v268_v14  ;;  %752 = vmatprep.subr.mxu1 %v268_v14  ;;  %v241_v46 = vld [vmem:[%s1084_s7 + $0xb0] sm:$0xff]  ;;  %v226_v47 = vld [vmem:[%s1084_s7 + $0x38] sm:$0xff]  ;;  %v227_v49 = vld [vmem:[%s1084_s7 + $0x40] sm:$0xff] }
  0x24   : > { %298 = vmatpush1.msra.mxu0 %v267_v15  ;;  %768 = vmatpush1.msra.mxu1 %v267_v15  ;;  %v242_v48 = vld [vmem:[%s1084_s7 + $0xb8] sm:$0xff]  ;;  %v243_v50 = vld [vmem:[%s1084_s7 + $0xc0] sm:$0xff]  ;;  %v228_v51 = vld [vmem:[%s1084_s7 + $0x48] sm:$0xff] }
  0x25   : > { %299 = vmatprep.subr.mxu0 %v266_v16  ;;  %753 = vmatprep.subr.mxu1 %v266_v16  ;;  %v244_v52 = vld [vmem:[%s1084_s7 + $0xc8] sm:$0xff]  ;;  %v229_v53 = vld [vmem:[%s1084_s7 + $0x50] sm:$0xff]  ;;  %v230_v55 = vld [vmem:[%s1084_s7 + $0x58] sm:$0xff] }
  0x26   : > { %300 = vmatpush1.msra.mxu0 %v265_v17  ;;  %769 = vmatpush1.msra.mxu1 %v265_v17  ;;  %v245_v54 = vld [vmem:[%s1084_s7 + $0xd0] sm:$0xff]  ;;  %v246_v56 = vld [vmem:[%s1084_s7 + $0xd8] sm:$0xff]  ;;  %v231_v57 = vld [vmem:[%s1084_s7 + $0x60] sm:$0xff] }
  0x27   : > { %301 = vmatprep.subr.mxu0 %v264_v18  ;;  %754 = vmatprep.subr.mxu1 %v264_v18  ;;  %v247_v58 = vld [vmem:[%s1084_s7 + $0xe0] sm:$0xff]  ;;  %v232_v59 = vld [vmem:[%s1084_s7 + $0x68] sm:$0xff]  ;;  %v233_v61 = vld [vmem:[%s1084_s7 + $0x70] sm:$0xff] }
  0x28   : > { %302 = vmatpush1.msra.mxu0 %v263_v19  ;;  %770 = vmatpush1.msra.mxu1 %v263_v19  ;;  %v248_v60 = vld [vmem:[%s1084_s7 + $0xe8] sm:$0xff]  ;;  %v249_v62 = vld [vmem:[%s1084_s7 + $0xf0] sm:$0xff]  ;;  %v234_v63 = vld [vmem:[%s1084_s7 + $0x78] sm:$0xff] }
  0x29   : > { %303 = vmatprep.subr.mxu0 %v262_v20  ;;  %755 = vmatprep.subr.mxu1 %v262_v20  ;;  %v250_v0 = vld [vmem:[%s1084_s7 + $0xf8] sm:$0xff] }
  0x2a   : > { %304 = vmatpush1.msra.mxu0 %v261_v21  ;;  %771 = vmatpush1.msra.mxu1 %v261_v21 }
  0x2b   : > { %305 = vmatprep.subr.mxu0 %v260_v22  ;;  %756 = vmatprep.subr.mxu1 %v260_v22 }
  0x2c   : > { %306 = vmatpush1.msra.mxu0 %v259_v23  ;;  %772 = vmatpush1.msra.mxu1 %v259_v23 }
  0x2d   : > { %307 = vmatprep.subr.mxu0 %v258_v24  ;;  %757 = vmatprep.subr.mxu1 %v258_v24 }
  0x2e   : > { %308 = vmatpush1.msra.mxu0 %v257_v25  ;;  %773 = vmatpush1.msra.mxu1 %v257_v25 }
  0x2f   : > { %309 = vmatprep.subr.mxu0 %v256_v26  ;;  %758 = vmatprep.subr.mxu1 %v256_v26 }
  0x30   : > { %310 = vmatpush1.msra.mxu0 %v255_v27  ;;  %774 = vmatpush1.msra.mxu1 %v255_v27 }
  0x31   : > { %311 = vmatprep.subr.mxu0 %v254_v28  ;;  %759 = vmatprep.subr.mxu1 %v254_v28 }
  0x32   : > { %312 = vmatpush1.msra.mxu0 %v253_v29  ;;  %775 = vmatpush1.msra.mxu1 %v253_v29 }
  0x33   : > { %313 = vmatprep.subr.mxu0 %v252_v30  ;;  %760 = vmatprep.subr.mxu1 %v252_v30 }
  0x34   : > { %314 = vmatpush1.msra.mxu0 %v251_v31  ;;  %776 = vmatpush1.msra.mxu1 %v251_v31 }
  0x35   : > { %347 = vmatprep.mubr.f32.mxu0 %v913_v34  ;;  %443 = vmatprep.mubr.f32.mxu1 %v913_v34 }
  0x36   : > { %348 = vmatmul.mubr.f32.vlgmr.msra.gmra.mxu0 %v219_v32  ;;  %444 = vmatmul.mubr.f32.vlgmr.msra.gmra.mxu1 %v235_v33 }
  0x37   : > { %353 = vmatprep.mubr.f32.mxu0 %v913_v34  ;;  %449 = vmatprep.mubr.f32.mxu1 %v913_v34 }
  0x3a   : > { %354 = vmatmul.mubr.f32.gmra.mxu0 %v220_v35  ;;  %450 = vmatmul.mubr.f32.gmra.mxu1 %v236_v36 }
  0x3b   : > { %359 = vmatprep.mubr.f32.mxu0 %v913_v34  ;;  %455 = vmatprep.mubr.f32.mxu1 %v913_v34 }
  0x3e   : > { %360 = vmatmul.mubr.f32.gmra.mxu0 %v221_v37  ;;  %456 = vmatmul.mubr.f32.gmra.mxu1 %v237_v38 }
  0x3f   : > { %365 = vmatprep.mubr.f32.mxu0 %v913_v34  ;;  %461 = vmatprep.mubr.f32.mxu1 %v913_v34 }
  0x42   : > { %366 = vmatmul.mubr.f32.gmra.mxu0 %v222_v39  ;;  %462 = vmatmul.mubr.f32.gmra.mxu1 %v238_v40 }
  0x43   : > { %371 = vmatprep.mubr.f32.mxu0 %v913_v34  ;;  %467 = vmatprep.mubr.f32.mxu1 %v913_v34 }
  0x46   : > { %372 = vmatmul.mubr.f32.gmra.mxu0 %v223_v41  ;;  %468 = vmatmul.mubr.f32.gmra.mxu1 %v239_v42 }
  0x47   : > { %377 = vmatprep.mubr.f32.mxu0 %v913_v34  ;;  %473 = vmatprep.mubr.f32.mxu1 %v913_v34 }
  0x4a   : > { %378 = vmatmul.mubr.f32.gmra.mxu0 %v224_v43  ;;  %474 = vmatmul.mubr.f32.gmra.mxu1 %v240_v44 }
  0x4b   : > { %383 = vmatprep.mubr.f32.mxu0 %v913_v34  ;;  %479 = vmatprep.mubr.f32.mxu1 %v913_v34 }
  0x4e   : > { %384 = vmatmul.mubr.f32.gmra.mxu0 %v225_v45  ;;  %480 = vmatmul.mubr.f32.gmra.mxu1 %v241_v46 }
  0x4f   : > { %389 = vmatprep.mubr.f32.mxu0 %v913_v34  ;;  %485 = vmatprep.mubr.f32.mxu1 %v913_v34 }
  0x52   : > { %390 = vmatmul.mubr.f32.gmra.mxu0 %v226_v47  ;;  %486 = vmatmul.mubr.f32.gmra.mxu1 %v242_v48 }
  0x53   : > { %395 = vmatprep.mubr.f32.mxu0 %v913_v34  ;;  %491 = vmatprep.mubr.f32.mxu1 %v913_v34 }
  0x56   : > { %396 = vmatmul.mubr.f32.gmra.mxu0 %v227_v49  ;;  %492 = vmatmul.mubr.f32.gmra.mxu1 %v243_v50 }
  0x57   : > { %401 = vmatprep.mubr.f32.mxu0 %v913_v34  ;;  %497 = vmatprep.mubr.f32.mxu1 %v913_v34 }
  0x5a   : > { %402 = vmatmul.mubr.f32.gmra.mxu0 %v228_v51  ;;  %498 = vmatmul.mubr.f32.gmra.mxu1 %v244_v52 }
  0x5b   : > { %407 = vmatprep.mubr.f32.mxu0 %v913_v34  ;;  %503 = vmatprep.mubr.f32.mxu1 %v913_v34 }
  0x5e   : > { %408 = vmatmul.mubr.f32.gmra.mxu0 %v229_v53  ;;  %504 = vmatmul.mubr.f32.gmra.mxu1 %v245_v54 }
  0x5f   : > { %413 = vmatprep.mubr.f32.mxu0 %v913_v34  ;;  %509 = vmatprep.mubr.f32.mxu1 %v913_v34 }
  0x62   : > { %414 = vmatmul.mubr.f32.gmra.mxu0 %v230_v55  ;;  %510 = vmatmul.mubr.f32.gmra.mxu1 %v246_v56 }
  0x63   : > { %419 = vmatprep.mubr.f32.mxu0 %v913_v34  ;;  %515 = vmatprep.mubr.f32.mxu1 %v913_v34 }
  0x66   : > { %420 = vmatmul.mubr.f32.gmra.mxu0 %v231_v57  ;;  %516 = vmatmul.mubr.f32.gmra.mxu1 %v247_v58 }
  0x67   : > { %425 = vmatprep.mubr.f32.mxu0 %v913_v34  ;;  %521 = vmatprep.mubr.f32.mxu1 %v913_v34 }
  0x6a   : > { %426 = vmatmul.mubr.f32.gmra.mxu0 %v232_v59  ;;  %522 = vmatmul.mubr.f32.gmra.mxu1 %v248_v60 }
  0x6b   : > { %431 = vmatprep.mubr.f32.mxu0 %v913_v34  ;;  %527 = vmatprep.mubr.f32.mxu1 %v913_v34 }
  0x6e   : > { %432 = vmatmul.mubr.f32.gmra.mxu0 %v233_v61  ;;  %528 = vmatmul.mubr.f32.gmra.mxu1 %v249_v62 }
  0x6f   : > { %437 = vmatprep.mubr.f32.mxu0 %v913_v34  ;;  %533 = vmatprep.mubr.f32.mxu1 %v913_v34 }
  0x72   : > { %438 = vmatmul.mubr.f32.gmra.mxu0 %v234_v63  ;;  %534 = vmatmul.mubr.f32.gmra.mxu1 %v250_v0 }
  0xf6   : > { %v349_v1 = vpop.f32.mrf.mxu0  ;;  %v445_v2 = vpop.f32.mrf.mxu1 }
  0xf7   : > { %540 = vst [vmem:[%s1156_s23] sm:$0xff] %v349_v1  ;;  %572 = vst [vmem:[%s1156_s23 + $0x100] sm:$0xff] %v445_v2 }
  0xf8   : > { %v351_v3 = vpop.f32.mrf.mxu0  ;;  %v447_v4 = vpop.f32.mrf.mxu1 }
  0xf9   : > { %541 = vst [vmem:[%s1156_s23 + $0x8] sm:$0xff] %v351_v3  ;;  %573 = vst [vmem:[%s1156_s23 + $0x108] sm:$0xff] %v447_v4 }
  0xfa   : > { %v355_v5 = vpop.f32.mrf.mxu0  ;;  %v451_v6 = vpop.f32.mrf.mxu1 }
  0xfb   : > { %542 = vst [vmem:[%s1156_s23 + $0x10] sm:$0xff] %v355_v5  ;;  %574 = vst [vmem:[%s1156_s23 + $0x110] sm:$0xff] %v451_v6 }
  0xfc   : > { %v357_v7 = vpop.f32.mrf.mxu0  ;;  %v453_v8 = vpop.f32.mrf.mxu1 }
  0xfd   : > { %543 = vst [vmem:[%s1156_s23 + $0x18] sm:$0xff] %v357_v7  ;;  %575 = vst [vmem:[%s1156_s23 + $0x118] sm:$0xff] %v453_v8 }
  0xfe   : > { %v361_v9 = vpop.f32.mrf.mxu0  ;;  %v457_v10 = vpop.f32.mrf.mxu1 }
  0xff   : > { %544 = vst [vmem:[%s1156_s23 + $0x20] sm:$0xff] %v361_v9  ;;  %576 = vst [vmem:[%s1156_s23 + $0x120] sm:$0xff] %v457_v10 }
 0x100   : > { %v363_v11 = vpop.f32.mrf.mxu0  ;;  %v459_v12 = vpop.f32.mrf.mxu1 }
 0x101   : > { %545 = vst [vmem:[%s1156_s23 + $0x28] sm:$0xff] %v363_v11  ;;  %577 = vst [vmem:[%s1156_s23 + $0x128] sm:$0xff] %v459_v12 }
 0x102   : > { %v367_v13 = vpop.f32.mrf.mxu0  ;;  %v463_v14 = vpop.f32.mrf.mxu1 }
 0x103   : > { %546 = vst [vmem:[%s1156_s23 + $0x30] sm:$0xff] %v367_v13  ;;  %578 = vst [vmem:[%s1156_s23 + $0x130] sm:$0xff] %v463_v14 }
 0x104   : > { %v369_v15 = vpop.f32.mrf.mxu0  ;;  %v465_v16 = vpop.f32.mrf.mxu1 }
 0x105   : > { %547 = vst [vmem:[%s1156_s23 + $0x38] sm:$0xff] %v369_v15  ;;  %579 = vst [vmem:[%s1156_s23 + $0x138] sm:$0xff] %v465_v16 }
 0x106   : > { %v373_v17 = vpop.f32.mrf.mxu0  ;;  %v469_v18 = vpop.f32.mrf.mxu1 }
 0x107   : > { %548 = vst [vmem:[%s1156_s23 + $0x40] sm:$0xff] %v373_v17  ;;  %580 = vst [vmem:[%s1156_s23 + $0x140] sm:$0xff] %v469_v18 }
 0x108   : > { %v375_v19 = vpop.f32.mrf.mxu0  ;;  %v471_v20 = vpop.f32.mrf.mxu1 }
 0x109   : > { %549 = vst [vmem:[%s1156_s23 + $0x48] sm:$0xff] %v375_v19  ;;  %581 = vst [vmem:[%s1156_s23 + $0x148] sm:$0xff] %v471_v20 }
 0x10a   : > { %v379_v21 = vpop.f32.mrf.mxu0  ;;  %v475_v22 = vpop.f32.mrf.mxu1 }
 0x10b   : > { %550 = vst [vmem:[%s1156_s23 + $0x50] sm:$0xff] %v379_v21  ;;  %582 = vst [vmem:[%s1156_s23 + $0x150] sm:$0xff] %v475_v22 }
 0x10c   : > { %v381_v23 = vpop.f32.mrf.mxu0  ;;  %v477_v24 = vpop.f32.mrf.mxu1 }
 0x10d   : > { %551 = vst [vmem:[%s1156_s23 + $0x58] sm:$0xff] %v381_v23  ;;  %583 = vst [vmem:[%s1156_s23 + $0x158] sm:$0xff] %v477_v24 }
 0x10e   : > { %v385_v25 = vpop.f32.mrf.mxu0  ;;  %v481_v26 = vpop.f32.mrf.mxu1 }
 0x10f   : > { %552 = vst [vmem:[%s1156_s23 + $0x60] sm:$0xff] %v385_v25  ;;  %584 = vst [vmem:[%s1156_s23 + $0x160] sm:$0xff] %v481_v26 }
 0x110   : > { %v387_v27 = vpop.f32.mrf.mxu0  ;;  %v483_v28 = vpop.f32.mrf.mxu1 }
 0x111   : > { %553 = vst [vmem:[%s1156_s23 + $0x68] sm:$0xff] %v387_v27  ;;  %585 = vst [vmem:[%s1156_s23 + $0x168] sm:$0xff] %v483_v28 }
 0x112   : > { %v391_v29 = vpop.f32.mrf.mxu0  ;;  %v487_v30 = vpop.f32.mrf.mxu1 }
 0x113   : > { %554 = vst [vmem:[%s1156_s23 + $0x70] sm:$0xff] %v391_v29  ;;  %586 = vst [vmem:[%s1156_s23 + $0x170] sm:$0xff] %v487_v30 }
 0x114   : > { %v393_v31 = vpop.f32.mrf.mxu0  ;;  %v489_v32 = vpop.f32.mrf.mxu1 }
 0x115   : > { %555 = vst [vmem:[%s1156_s23 + $0x78] sm:$0xff] %v393_v31  ;;  %587 = vst [vmem:[%s1156_s23 + $0x178] sm:$0xff] %v489_v32 }
 0x116   : > { %v397_v33 = vpop.f32.mrf.mxu0  ;;  %v493_v34 = vpop.f32.mrf.mxu1 }
 0x117   : > { %556 = vst [vmem:[%s1156_s23 + $0x80] sm:$0xff] %v397_v33  ;;  %588 = vst [vmem:[%s1156_s23 + $0x180] sm:$0xff] %v493_v34 }
 0x118   : > { %v399_v35 = vpop.f32.mrf.mxu0  ;;  %v495_v36 = vpop.f32.mrf.mxu1 }
 0x119   : > { %557 = vst [vmem:[%s1156_s23 + $0x88] sm:$0xff] %v399_v35  ;;  %589 = vst [vmem:[%s1156_s23 + $0x188] sm:$0xff] %v495_v36 }
 0x11a   : > { %v403_v37 = vpop.f32.mrf.mxu0  ;;  %v499_v38 = vpop.f32.mrf.mxu1 }
 0x11b   : > { %558 = vst [vmem:[%s1156_s23 + $0x90] sm:$0xff] %v403_v37  ;;  %590 = vst [vmem:[%s1156_s23 + $0x190] sm:$0xff] %v499_v38 }
 0x11c   : > { %v405_v39 = vpop.f32.mrf.mxu0  ;;  %v501_v40 = vpop.f32.mrf.mxu1 }
 0x11d   : > { %559 = vst [vmem:[%s1156_s23 + $0x98] sm:$0xff] %v405_v39  ;;  %591 = vst [vmem:[%s1156_s23 + $0x198] sm:$0xff] %v501_v40 }
 0x11e   : > { %v409_v41 = vpop.f32.mrf.mxu0  ;;  %v505_v42 = vpop.f32.mrf.mxu1 }
 0x11f   : > { %560 = vst [vmem:[%s1156_s23 + $0xa0] sm:$0xff] %v409_v41  ;;  %592 = vst [vmem:[%s1156_s23 + $0x1a0] sm:$0xff] %v505_v42 }
 0x120   : > { %v411_v43 = vpop.f32.mrf.mxu0  ;;  %v507_v44 = vpop.f32.mrf.mxu1 }
 0x121   : > { %561 = vst [vmem:[%s1156_s23 + $0xa8] sm:$0xff] %v411_v43  ;;  %593 = vst [vmem:[%s1156_s23 + $0x1a8] sm:$0xff] %v507_v44 }
 0x122   : > { %v415_v45 = vpop.f32.mrf.mxu0  ;;  %v511_v46 = vpop.f32.mrf.mxu1 }
 0x123   : > { %562 = vst [vmem:[%s1156_s23 + $0xb0] sm:$0xff] %v415_v45  ;;  %594 = vst [vmem:[%s1156_s23 + $0x1b0] sm:$0xff] %v511_v46 }
 0x124   : > { %v417_v47 = vpop.f32.mrf.mxu0  ;;  %v513_v48 = vpop.f32.mrf.mxu1 }
 0x125   : > { %563 = vst [vmem:[%s1156_s23 + $0xb8] sm:$0xff] %v417_v47  ;;  %595 = vst [vmem:[%s1156_s23 + $0x1b8] sm:$0xff] %v513_v48 }
 0x126   : > { %v421_v49 = vpop.f32.mrf.mxu0  ;;  %v517_v50 = vpop.f32.mrf.mxu1 }
 0x127   : > { %564 = vst [vmem:[%s1156_s23 + $0xc0] sm:$0xff] %v421_v49  ;;  %596 = vst [vmem:[%s1156_s23 + $0x1c0] sm:$0xff] %v517_v50 }
 0x128   : > { %v423_v51 = vpop.f32.mrf.mxu0  ;;  %v519_v52 = vpop.f32.mrf.mxu1 }
 0x129   : > { %565 = vst [vmem:[%s1156_s23 + $0xc8] sm:$0xff] %v423_v51  ;;  %597 = vst [vmem:[%s1156_s23 + $0x1c8] sm:$0xff] %v519_v52 }
 0x12a   : > { %v427_v53 = vpop.f32.mrf.mxu0  ;;  %v523_v54 = vpop.f32.mrf.mxu1 }
 0x12b   : > { %566 = vst [vmem:[%s1156_s23 + $0xd0] sm:$0xff] %v427_v53  ;;  %598 = vst [vmem:[%s1156_s23 + $0x1d0] sm:$0xff] %v523_v54 }
 0x12c   : > { %v429_v55 = vpop.f32.mrf.mxu0  ;;  %v525_v56 = vpop.f32.mrf.mxu1 }
 0x12d   : > { %567 = vst [vmem:[%s1156_s23 + $0xd8] sm:$0xff] %v429_v55  ;;  %599 = vst [vmem:[%s1156_s23 + $0x1d8] sm:$0xff] %v525_v56 }
 0x12e   : > { %v433_v57 = vpop.f32.mrf.mxu0  ;;  %v529_v58 = vpop.f32.mrf.mxu1 }
 0x12f   : > { %568 = vst [vmem:[%s1156_s23 + $0xe0] sm:$0xff] %v433_v57  ;;  %600 = vst [vmem:[%s1156_s23 + $0x1e0] sm:$0xff] %v529_v58 }
 0x130   : > { %v435_v59 = vpop.f32.mrf.mxu0  ;;  %v531_v60 = vpop.f32.mrf.mxu1 }
 0x131   : > { %569 = vst [vmem:[%s1156_s23 + $0xe8] sm:$0xff] %v435_v59  ;;  %601 = vst [vmem:[%s1156_s23 + $0x1e8] sm:$0xff] %v531_v60 }
 0x132   : > { %v439_v61 = vpop.f32.mrf.mxu0  ;;  %v535_v62 = vpop.f32.mrf.mxu1 }
 0x133   : > { %570 = vst [vmem:[%s1156_s23 + $0xf0] sm:$0xff] %v439_v61  ;;  %602 = vst [vmem:[%s1156_s23 + $0x1f0] sm:$0xff] %v535_v62 }
 0x134   : > { %v441_v63 = vpop.f32.mrf.mxu0  ;;  %v537_v0 = vpop.f32.mrf.mxu1 }
 0x135   : > { %571 = vst [vmem:[%s1156_s23 + $0xf8] sm:$0xff] %v441_v63  ;;  %603 = vst [vmem:[%s1156_s23 + $0x1f8] sm:$0xff] %v537_v0 }
 0x136   : > { %848 = shalt.err (!%p845_p5)
}
 0x137   : > { %s849_s5 = scalar_lea.hbm %s1223_s28, 8192  ;;  %s853_s7 = scalar_lea.hbm %s1280_s2, 16384 }
 0x138   : > { %p850_p6 = scmp.ne.s32.totalorder %s1223_s28, %s849_s5  ;;  %p854_p10 = scmp.lt.s32.totalorder %s1223_s28, %s1280_s2 }
 0x139   : > { %p855_p11 = scmp.lt.s32.totalorder %s853_s7, %s849_s5 }
 0x13a   : > { %p851_p7 = pnand %p850_p6, %p972_p4 }
 0x13b   : > { %p856_p12 = por %p855_p11, %p854_p10 }
 0x13c   : > { %p852_p9 = pneg %p851_p7 }
 0x13e   : > { %p857_p13 = pnand %p856_p12, %p852_p9 }
 0x140   : > { %860 = shalt.err (!%p857_p13)
}
 0x141   : > { %s915_s16 = smov 256   ;;  %s916_s20 = smov 16  }
 0x142   : > { %777 = dma.vmem_to_hbm [thread:$0]  (%p972_p4), %s1225_s25, 8192, %s1223_s28, %s1233_s12, %s915_s16, %s915_s16, %s916_s20  }
 0x143 PF: > { %p783_p0 = scmp.ge.s32.totalorder %s911_s14, 2  ;;  %s638_s23 = sand.u32 1, %s891_s9  }
 0x144   : > { %s639_s24 = scalar_lea.sflag [#allocation3], %s638_s23 }
 0x145   : > { %p780_p1 = pnand %p783_p0, %p979_p8 }
 0x147   : > { %p781_p2 = pneg %p780_p1 }
 0x149   : > { %886 = dma.done.wait (%p781_p2), %s639_s24, 8192  }
 0x14a   : > { %888 = vsyncadd (%p781_p2), %s639_s24, 4294959104  ;;  %s15_s14 = sadd.s32 1, %s911_s14   ;;  %s1283_s9 = smov %s895_s10 }
 0x14b   : > { %p12_p3 = scmp.ge.s32.totalorder %s15_s14, 4   ;;  %s1284_s10 = smov %s899_s11 }
 0x14c   : > { %s1285_s11 = smov %s985_s22  ;;  %s1286_s12 = smov %s907_s13 }
 0x14d   : > { %s1287_s13 = smov %s1289_s17  ;;  %14 = sbr.rel (!%p12_p3) target bundleno = 4 (0x4), region = 66 }
 0x152   :  { %644 = vsyncpa [#allocation3], 1 }
 0x153   :  { %646 = vsyncpa [#allocation3 + $0x1], 1 }

</bundles_post_ra>
